<compile_context>
chip_gen: v5e
topology: v5e:2x2
jax: 0.10.0
libtpu: 0.0.40
codegen_flags: <defaults>
</compile_context>

<pallas_src>
import math

import jax
import jax.numpy as jnp
from jax.experimental import pallas as pl
from jax.experimental.pallas import tpu as pltpu

_MB = 1024 * 1024
_HAS_BUFFERED = hasattr(pl, "Buffered")


def _round_up(x, m):
    return ((x + m - 1) // m) * m


def _tpu_config():
    """Per-generation VMEM limit, MXU tile alignment, TensorCores per chip."""
    kind = ""
    try:
        kind = jax.devices()[0].device_kind.lower()
    except Exception:
        pass
    if "v7" in kind:        # 64 MiB VMEM per TC, 2 TC/chip, 256x256 MXU
        return {"vmem_limit_bytes": 60 * _MB, "mxu_align": 256, "num_cores": 2}
    if "v6" in kind:        # 128 MiB VMEM, 1 TC, 256x256 MXU
        return {"vmem_limit_bytes": 104 * _MB, "mxu_align": 256, "num_cores": 1}
    if "v5" in kind or "v4" in kind:   # 128 MiB VMEM, 128x128 MXU
        return {"vmem_limit_bytes": 100 * _MB, "mxu_align": 128, "num_cores": 1}
    if "v3" in kind or "v2" in kind:   # small VMEM parts
        return {"vmem_limit_bytes": 14 * _MB, "mxu_align": 128, "num_cores": 1}
    # unknown: conservative limit that fits every generation's physical VMEM
    return {"vmem_limit_bytes": 56 * _MB, "mxu_align": 128, "num_cores": 1}


# --------------------------------------------------------------------------
# Kernel: one (TM, TH) step of relu(x @ W1 + b1) @ W2 + b2, f32 accumulation.
# --------------------------------------------------------------------------
def ffn_kernel(x_ref, w1_ref, b1_ref, w2_ref, b2_ref, o_ref, acc_ref):
    h_idx = pl.program_id(1)

    @pl.when(h_idx == 0)
    def _():
        acc_ref[...] = jnp.zeros_like(acc_ref)

    # dense1 chunk: (TM, D) @ (D, TH) -> f32, add b1 chunk, ReLU.
    hidden = jnp.dot(x_ref[...], w1_ref[...], preferred_element_type=jnp.float32)
    hidden = jnp.maximum(hidden + b1_ref[...], 0.0)

    # dense2 partial: (TM, TH) @ (TH, D), accumulated in f32 scratch.
    acc_ref[...] += jnp.dot(hidden.astype(w2_ref.dtype), w2_ref[...],
                            preferred_element_type=jnp.float32)

    @pl.when(h_idx == pl.num_programs(1) - 1)
    def _():
        o_ref[...] = (acc_ref[...] + b2_ref[...]).astype(o_ref.dtype)


# --------------------------------------------------------------------------
# One-time parameter preparation (pad + cast outside the per-call hot path).
# --------------------------------------------------------------------------
def prepare_ffn_params(w1, b1, w2, b2, *, mxu_dtype=jnp.bfloat16, mxu_align=None):
    """w1: (d_model, ffn_hidden), w2: (ffn_hidden, d_model) (transposed vs PyTorch)."""
    if mxu_align is None:
        mxu_align = _tpu_config()["mxu_align"]
    D, H = w1.shape

    # Only pad when needed; when padding anyway, pad to the MXU tile (256 on
    # v6e/v7x) for full systolic-array occupancy.
    d_pad = D if D % 128 == 0 else _round_up(D, mxu_align)
    h_pad = H if H % 128 == 0 else _round_up(H, mxu_align)

    w_dtype = mxu_dtype if mxu_dtype is not None else w1.dtype
    w1p = w1 if w1.dtype == w_dtype else w1.astype(w_dtype)
    w2p = w2 if w2.dtype == w_dtype else w2.astype(w_dtype)
    if (d_pad, h_pad) != (D, H):
        w1p = jnp.pad(w1p, ((0, d_pad - D), (0, h_pad - H)))
        w2p = jnp.pad(w2p, ((0, h_pad - H), (0, d_pad - D)))

    b1p = b1.astype(jnp.float32)
    b2p = b2.astype(jnp.float32)
    if h_pad != H:
        b1p = jnp.pad(b1p, (0, h_pad - H))
    if d_pad != D:
        b2p = jnp.pad(b2p, (0, d_pad - D))

    return {
        "w1": w1p, "b1": b1p.reshape(1, h_pad),
        "w2": w2p, "b2": b2p.reshape(1, d_pad),
        "d_model": D, "ffn_hidden": H,
        "d_pad": d_pad, "h_pad": h_pad,
        "mxu_dtype": mxu_dtype,
    }


# --------------------------------------------------------------------------
# VMEM-aware tile selection.
# --------------------------------------------------------------------------
def _vmem_bytes(tm, th, d_pad, x_bytes, w_bytes, out_bytes, weight_bufs):
    x_tile = 2 * tm * d_pad * x_bytes            # double-buffered activation tile
    out_tile = 2 * tm * d_pad * out_bytes        # double-buffered output tile
    w_slabs = weight_bufs * 2 * d_pad * th * w_bytes   # W1 + W2 slabs
    b_slabs = weight_bufs * th * 4 + 2 * d_pad * 4
    acc = tm * d_pad * 4                         # f32 accumulator scratch
    hidden = tm * th * (4 + w_bytes)             # f32 GEMM1 temp + cast copy
    return x_tile + out_tile + w_slabs + b_slabs + acc + hidden


def _select_tiles(M, d_pad, h_pad, x_bytes, w_bytes, out_bytes, *,
                  vmem_limit_bytes, num_cores, block_m=None, block_h=None):
    row_align = 16 if x_bytes == 2 else 8
    budget = int(vmem_limit_bytes * 0.85)        # headroom for compiler scratch

    # ---- token tile (M axis, "parallel") --------------------------------
    if block_m is None:
        # single-core parts want bigger token tiles (arithmetic intensity);
        # v7x splits across 2 TensorCores anyway.
        block_m = 1024 if num_cores == 1 else 512
    min_nm = 2 if (num_cores >= 2 and M >= 2 * row_align) else 1
    n_m = max(pl.cdiv(M, block_m), min_nm)
    tm = _round_up(pl.cdiv(M, n_m), row_align)

    # ---- hidden tile (H axis, "arbitrary" reduction) --------------------
    # Candidates must divide h_pad exactly (weights are pre-padded once) and
    # be lane-dense multiples of 128; 128 is always a valid fallback.
    ths = [h_pad // k for k in range(1, h_pad // 128 + 1)
           if h_pad % k == 0 and (h_pad // k) % 128 == 0]
    if block_h is not None:
        ths = [t for t in ths if t <= max(block_h, 128)] or [ths[-1]]

    def fits(tm_, th_):
        wbufs = 1 if (th_ == h_pad and _HAS_BUFFERED) else 2
        return _vmem_bytes(tm_, th_, d_pad, x_bytes, w_bytes, out_bytes, wbufs) <= budget

    while True:
        th = next((t for t in ths if fits(tm, t)), ths[-1])
        if fits(tm, th) or tm <= row_align:
            break
        tm = _round_up(max(tm // 2, row_align), row_align)

    n_h = h_pad // th
    n_m = pl.cdiv(M, tm)
    m_pad = n_m * tm
    return tm, n_m, m_pad, th, n_h


def _weight_spec(shape, index_map, single_buffer):
    """Weight BlockSpec, single-buffered when its block index never changes."""
    if single_buffer and _HAS_BUFFERED:
        try:
            return pl.BlockSpec(shape, index_map, pipeline_mode=pl.Buffered(1))
        except TypeError:
            pass
    return pl.BlockSpec(shape, index_map)


# --------------------------------------------------------------------------
# Wrapper: x (batch, seq, d_model) -> (batch, seq, d_model)
# --------------------------------------------------------------------------
def position_wise_ffn(x, params, *, block_m=None, block_h=None,
                      vmem_limit_bytes=None):
    B, S, D = x.shape
    assert D == params["d_model"]
    M = B * S
    out_dtype = x.dtype

    w1p, b1p, w2p, b2p = params["w1"], params["b1"], params["w2"], params["b2"]
    d_pad, h_pad = params["d_pad"], params["h_pad"]
    mxu_dtype = params["mxu_dtype"]

    cfg = _tpu_config()
    if vmem_limit_bytes is None:
        vmem_limit_bytes = cfg["vmem_limit_bytes"]

    x_kernel_dtype = mxu_dtype if mxu_dtype is not None else x.dtype
    x_bytes = jnp.dtype(x_kernel_dtype).itemsize
    w_bytes = jnp.dtype(w1p.dtype).itemsize
    out_bytes = jnp.dtype(out_dtype).itemsize

    tm, n_m, m_pad, th, n_h = _select_tiles(
        M, d_pad, h_pad, x_bytes, w_bytes, out_bytes,
        vmem_limit_bytes=vmem_limit_bytes, num_cores=cfg["num_cores"],
        block_m=block_m, block_h=block_h)

    # Per-call activation prep only (weights were prepared once, outside the
    # hot path); padding / casting guarded so aligned inputs emit no extra ops.
    if x.dtype != x_kernel_dtype:
        x = x.astype(x_kernel_dtype)
    x2d = x.reshape(M, D)
    if (m_pad, d_pad) != (M, D):
        x2d = jnp.pad(x2d, ((0, m_pad - M), (0, d_pad - D)))

    # Weight HBM traffic: 1 pass when resident (n_h == 1), else one pass per
    # token tile.
    weight_passes = 1 if n_h == 1 else n_m
    cost = pl.CostEstimate(
        flops=4 * m_pad * h_pad * d_pad,   # two GEMMs, 2 flops per MAC
        transcendentals=0,
        bytes_accessed=int(
            x2d.size * x2d.dtype.itemsize
            + weight_passes * (w1p.size * w1p.dtype.itemsize
                               + w2p.size * w2p.dtype.itemsize
                               + b1p.size * 4)
            + b2p.size * 4
            + m_pad * d_pad * out_bytes),
    )

    single_buffer = (n_h == 1)

    def run(use_single_buffer):
        in_specs = [
            pl.BlockSpec((tm, d_pad), lambda m, h: (m, 0)),                     # x tile
            _weight_spec((d_pad, th), lambda m, h: (0, h), use_single_buffer),  # W1 slab
            _weight_spec((1, th),     lambda m, h: (0, h), use_single_buffer),  # b1 slab
            _weight_spec((th, d_pad), lambda m, h: (h, 0), use_single_buffer),  # W2 slab
            _weight_spec((1, d_pad),  lambda m, h: (0, 0), use_single_buffer),  # b2
        ]
        return pl.pallas_call(
            ffn_kernel,
            out_shape=jax.ShapeDtypeStruct((m_pad, d_pad), out_dtype),
            grid=(n_m, n_h),
            in_specs=in_specs,
            out_specs=pl.BlockSpec((tm, d_pad), lambda m, h: (m, 0)),
            scratch_shapes=[pltpu.VMEM((tm, d_pad), jnp.float32)],
            compiler_params=pltpu.CompilerParams(
                dimension_semantics=("parallel", "arbitrary"),
                vmem_limit_bytes=vmem_limit_bytes,
            ),
            cost_estimate=cost,
        )(x2d, w1p, b1p, w2p, b2p)

    try:
        out = run(single_buffer)
    except Exception:
        if not single_buffer:
            raise
        out = run(False)   # fall back to default double-buffered weight specs

    return out[:M, :D].reshape(B, S, D)


# --------------------------------------------------------------------------
# Plain-JAX reference (mirrors the kernel's casting behavior).
# --------------------------------------------------------------------------
def reference_ffn(x, w1, b1, w2, b2, mxu_dtype=jnp.bfloat16):
    out_dtype = x.dtype
    if mxu_dtype is not None:
        x = x.astype(mxu_dtype)
        w1 = w1.astype(mxu_dtype)
        w2 = w2.astype(mxu_dtype)
    B, S, D = x.shape
    h = jnp.dot(x.reshape(-1, D), w1, preferred_element_type=jnp.float32)
    h = jnp.maximum(h + b1.astype(jnp.float32), 0.0)
    y = jnp.dot(h.astype(w2.dtype), w2, preferred_element_type=jnp.float32)
    y = y + b2.astype(jnp.float32)
    return y.astype(out_dtype).reshape(B, S, D)


def init_linear_params(key, in_features, out_features, dtype=jnp.float32):
    """Deterministic nn.Linear-style init: U(-1/sqrt(in), 1/sqrt(in))."""
    kw, kb = jax.random.split(key)
    bound = 1.0 / math.sqrt(in_features)
    # stored transposed relative to PyTorch: (in_features, out_features)
    w = jax.random.uniform(kw, (in_features, out_features), dtype,
                           minval=-bound, maxval=bound)
    b = jax.random.uniform(kb, (out_features,), dtype,
                           minval=-bound, maxval=bound)
    return w, b


if __name__ == "__main__":
    # Small but lane-dense shapes (d_model / ffn_hidden multiples of 128).
    batch, seq, d_model, ffn_hidden = 2, 16, 128, 256

    key = jax.random.PRNGKey(0)
    kx, k1, k2 = jax.random.split(key, 3)

    x = jax.random.normal(kx, (batch, seq, d_model), jnp.float32)
    w1, b1 = init_linear_params(k1, d_model, ffn_hidden)
    w2, b2 = init_linear_params(k2, ffn_hidden, d_model)

    # Default production path: bf16 MXU operands, f32 accumulation.
    params_bf16 = prepare_ffn_params(w1, b1, w2, b2)            # bf16 default
    y_bf = jax.block_until_ready(position_wise_ffn(x, params_bf16))
    ref_bf = reference_ffn(x, w1, b1, w2, b2, mxu_dtype=jnp.bfloat16)
    assert y_bf.shape == x.shape
    assert jnp.allclose(y_bf, ref_bf, atol=2e-2, rtol=2e-2), "bf16 mismatch vs reference"

    # Strict f32 path.
    params_f32 = prepare_ffn_params(w1, b1, w2, b2, mxu_dtype=None)
    y = jax.block_until_ready(position_wise_ffn(x, params_f32))
    ref = reference_ffn(x, w1, b1, w2, b2, mxu_dtype=None)
    assert jnp.allclose(y, ref, atol=1e-4, rtol=1e-4), "f32 mismatch vs reference"

    print("KERNEL_OK")
</pallas_src>

<mosaic_0001>
module attributes {stable_mosaic.version = 11 : i64} {
  func.func @ffn_kernel(%arg0: i32, %arg1: i32, %arg2: memref<32x128xbf16, #tpu.memory_space<vmem>>, %arg3: memref<128x256xbf16, #tpu.memory_space<vmem>>, %arg4: memref<1x256xf32, #tpu.memory_space<vmem>>, %arg5: memref<256x128xbf16, #tpu.memory_space<vmem>>, %arg6: memref<1x128xf32, #tpu.memory_space<vmem>>, %arg7: memref<32x128xf32, #tpu.memory_space<vmem>>, %arg8: memref<32x128xf32, #tpu.memory_space<vmem>>) attributes {dimension_semantics = [#tpu.dimension_semantics<parallel>, #tpu.dimension_semantics<arbitrary>], iteration_bounds = array<i64: 1, 1>, scalar_prefetch = 0 : i64, scratch_operands = 1 : i64, tpu.core_type = #tpu.core_type<tc>, window_params = [{transform_indices = @transform_0, window_bounds = array<i64: 32, 128>}, {pipeline_mode = #tpu.pipeline_mode<synchronous>, transform_indices = @transform_1, window_bounds = array<i64: 128, 256>}, {pipeline_mode = #tpu.pipeline_mode<synchronous>, transform_indices = @transform_2, window_bounds = array<i64: 1, 256>}, {pipeline_mode = #tpu.pipeline_mode<synchronous>, transform_indices = @transform_3, window_bounds = array<i64: 256, 128>}, {pipeline_mode = #tpu.pipeline_mode<synchronous>, transform_indices = @transform_4, window_bounds = array<i64: 1, 128>}, {transform_indices = @transform_5, window_bounds = array<i64: 32, 128>}]} {
    %c0_i32 = arith.constant 0 : i32
    %0 = arith.cmpi eq, %arg1, %c0_i32 : i32
    %1 = arith.extui %0 : i1 to i32
    %c0_i32_0 = arith.constant 0 : i32
    %2 = arith.cmpi ne, %1, %c0_i32_0 : i32
    scf.if %2 {
      %cst_16 = arith.constant 0.000000e+00 : f32
      %20 = vector.broadcast %cst_16 : f32 to vector<32x128xf32>
      %c0_17 = arith.constant 0 : index
      %c0_18 = arith.constant 0 : index
      %21 = vector.load %arg8[%c0_17, %c0_18] : memref<32x128xf32, #tpu.memory_space<vmem>>, vector<32x128xf32>
      tpu.vector_store %arg8[%c0_17, %c0_18], %20 {strides = array<i32>} : memref<32x128xf32, #tpu.memory_space<vmem>>, vector<32x128xf32>,
    } else {
    }
    %c0 = arith.constant 0 : index
    %c0_1 = arith.constant 0 : index
    %3 = vector.load %arg2[%c0, %c0_1] : memref<32x128xbf16, #tpu.memory_space<vmem>>, vector<32x128xbf16>
    %c0_2 = arith.constant 0 : index
    %c0_3 = arith.constant 0 : index
    %4 = vector.load %arg3[%c0_2, %c0_3] : memref<128x256xbf16, #tpu.memory_space<vmem>>, vector<128x256xbf16>
    %cst = arith.constant dense<0.000000e+00> : vector<32x256xf32>
    %5 = tpu.matmul %3, %4, %cst {dimension_numbers = #tpu.dot_dimension_numbers<[1], [0], [0], [1], [0, 0, 1, 1], [], []>} : vector<32x128xbf16>, vector<128x256xbf16>, vector<32x256xf32> -> vector<32x256xf32>
    %c0_4 = arith.constant 0 : index
    %c0_5 = arith.constant 0 : index
    %6 = vector.load %arg4[%c0_4, %c0_5] : memref<1x256xf32, #tpu.memory_space<vmem>>, vector<1x256xf32>
    %7 = vector.broadcast %6 : vector<1x256xf32> to vector<32x256xf32>
    %8 = arith.addf %5, %7 : vector<32x256xf32>
    %cst_6 = arith.constant 0.000000e+00 : f32
    %9 = vector.broadcast %cst_6 : f32 to vector<32x256xf32>
    %10 = arith.maximumf %8, %9 : vector<32x256xf32>
    %c0_7 = arith.constant 0 : index
    %c0_8 = arith.constant 0 : index
    %11 = vector.load %arg8[%c0_7, %c0_8] : memref<32x128xf32, #tpu.memory_space<vmem>>, vector<32x128xf32>
    %12 = arith.truncf %10 : vector<32x256xf32> to vector<32x256xbf16>
    %c0_9 = arith.constant 0 : index
    %c0_10 = arith.constant 0 : index
    %13 = vector.load %arg5[%c0_9, %c0_10] : memref<256x128xbf16, #tpu.memory_space<vmem>>, vector<256x128xbf16>
    %cst_11 = arith.constant dense<0.000000e+00> : vector<32x128xf32>
    %14 = tpu.matmul %12, %13, %cst_11 {dimension_numbers = #tpu.dot_dimension_numbers<[1], [0], [0], [1], [0, 0, 1, 1], [], []>} : vector<32x256xbf16>, vector<256x128xbf16>, vector<32x128xf32> -> vector<32x128xf32>
    %15 = arith.addf %11, %14 : vector<32x128xf32>
    %c0_12 = arith.constant 0 : index
    %c0_13 = arith.constant 0 : index
    %16 = vector.load %arg8[%c0_12, %c0_13] : memref<32x128xf32, #tpu.memory_space<vmem>>, vector<32x128xf32>
    tpu.vector_store %arg8[%c0_12, %c0_13], %15 {strides = array<i32>} : memref<32x128xf32, #tpu.memory_space<vmem>>, vector<32x128xf32>,
    %c0_i32_14 = arith.constant 0 : i32
    %17 = arith.cmpi eq, %arg1, %c0_i32_14 : i32
    %18 = arith.extui %17 : i1 to i32
    %c0_i32_15 = arith.constant 0 : i32
    %19 = arith.cmpi ne, %18, %c0_i32_15 : i32
    scf.if %19 {
      %c0_16 = arith.constant 0 : index
      %c0_17 = arith.constant 0 : index
      %20 = vector.load %arg8[%c0_16, %c0_17] : memref<32x128xf32, #tpu.memory_space<vmem>>, vector<32x128xf32>
      %c0_18 = arith.constant 0 : index
      %c0_19 = arith.constant 0 : index
      %21 = vector.load %arg6[%c0_18, %c0_19] : memref<1x128xf32, #tpu.memory_space<vmem>>, vector<1x128xf32>
      %22 = vector.broadcast %21 : vector<1x128xf32> to vector<32x128xf32>
      %23 = arith.addf %20, %22 : vector<32x128xf32>
      %c0_20 = arith.constant 0 : index
      %c0_21 = arith.constant 0 : index
      %24 = vector.load %arg7[%c0_20, %c0_21] : memref<32x128xf32, #tpu.memory_space<vmem>>, vector<32x128xf32>
      tpu.vector_store %arg7[%c0_20, %c0_21], %23 {strides = array<i32>} : memref<32x128xf32, #tpu.memory_space<vmem>>, vector<32x128xf32>,
    } else {
    }
    return
  }
  func.func @transform_0(%arg0: i32, %arg1: i32) -> (i32, i32) {
    %c0_i32 = arith.constant 0 : i32
    %c0_i32_0 = arith.constant 0 : i32
    return %arg0, %c0_i32 : i32, i32
  }
  func.func @transform_1(%arg0: i32, %arg1: i32) -> (i32, i32) {
    %c0_i32 = arith.constant 0 : i32
    %c0_i32_0 = arith.constant 0 : i32
    return %c0_i32, %arg1 : i32, i32
  }
  func.func @transform_2(%arg0: i32, %arg1: i32) -> (i32, i32) {
    %c0_i32 = arith.constant 0 : i32
    %c0_i32_0 = arith.constant 0 : i32
    return %c0_i32, %arg1 : i32, i32
  }
  func.func @transform_3(%arg0: i32, %arg1: i32) -> (i32, i32) {
    %c0_i32 = arith.constant 0 : i32
    %c0_i32_0 = arith.constant 0 : i32
    return %arg1, %c0_i32 : i32, i32
  }
  func.func @transform_4(%arg0: i32, %arg1: i32) -> (i32, i32) {
    %c0_i32 = arith.constant 0 : i32
    %c0_i32_0 = arith.constant 0 : i32
    %c0_i32_1 = arith.constant 0 : i32
    return %c0_i32, %c0_i32_0 : i32, i32
  }
  func.func @transform_5(%arg0: i32, %arg1: i32) -> (i32, i32) {
    %c0_i32 = arith.constant 0 : i32
    %c0_i32_0 = arith.constant 0 : i32
    return %arg0, %c0_i32 : i32, i32
  }
}

module attributes {stable_mosaic.version = 11 : i64} {
  func.func @ffn_kernel(%arg0: i32, %arg1: i32, %arg2: memref<32x128xbf16, #tpu.memory_space<vmem>>, %arg3: memref<128x256xbf16, #tpu.memory_space<vmem>>, %arg4: memref<1x256xf32, #tpu.memory_space<vmem>>, %arg5: memref<256x128xbf16, #tpu.memory_space<vmem>>, %arg6: memref<1x128xf32, #tpu.memory_space<vmem>>, %arg7: memref<32x128xf32, #tpu.memory_space<vmem>>, %arg8: memref<32x128xf32, #tpu.memory_space<vmem>>) attributes {dimension_semantics = [#tpu.dimension_semantics<parallel>, #tpu.dimension_semantics<arbitrary>], iteration_bounds = array<i64: 1, 1>, scalar_prefetch = 0 : i64, scratch_operands = 1 : i64, tpu.core_type = #tpu.core_type<tc>, window_params = [{transform_indices = @transform_0, window_bounds = array<i64: 32, 128>}, {transform_indices = @transform_1, window_bounds = array<i64: 128, 256>}, {transform_indices = @transform_2, window_bounds = array<i64: 1, 256>}, {transform_indices = @transform_3, window_bounds = array<i64: 256, 128>}, {pipeline_mode = #tpu.pipeline_mode<synchronous>, transform_indices = @transform_4, window_bounds = array<i64: 1, 128>}, {transform_indices = @transform_5, window_bounds = array<i64: 32, 128>}]} {
    %c0_i32 = arith.constant 0 : i32
    %0 = arith.cmpi eq, %arg1, %c0_i32 : i32
    %1 = arith.extui %0 : i1 to i32
    %c0_i32_0 = arith.constant 0 : i32
    %2 = arith.cmpi ne, %1, %c0_i32_0 : i32
    scf.if %2 {
      %cst_16 = arith.constant 0.000000e+00 : f32
      %20 = vector.broadcast %cst_16 : f32 to vector<32x128xf32>
      %c0_17 = arith.constant 0 : index
      %c0_18 = arith.constant 0 : index
      %21 = vector.load %arg8[%c0_17, %c0_18] : memref<32x128xf32, #tpu.memory_space<vmem>>, vector<32x128xf32>
      tpu.vector_store %arg8[%c0_17, %c0_18], %20 {strides = array<i32>} : memref<32x128xf32, #tpu.memory_space<vmem>>, vector<32x128xf32>,
    } else {
    }
    %c0 = arith.constant 0 : index
    %c0_1 = arith.constant 0 : index
    %3 = vector.load %arg2[%c0, %c0_1] : memref<32x128xbf16, #tpu.memory_space<vmem>>, vector<32x128xbf16>
    %c0_2 = arith.constant 0 : index
    %c0_3 = arith.constant 0 : index
    %4 = vector.load %arg3[%c0_2, %c0_3] : memref<128x256xbf16, #tpu.memory_space<vmem>>, vector<128x256xbf16>
    %cst = arith.constant dense<0.000000e+00> : vector<32x256xf32>
    %5 = tpu.matmul %3, %4, %cst {dimension_numbers = #tpu.dot_dimension_numbers<[1], [0], [0], [1], [0, 0, 1, 1], [], []>} : vector<32x128xbf16>, vector<128x256xbf16>, vector<32x256xf32> -> vector<32x256xf32>
    %c0_4 = arith.constant 0 : index
    %c0_5 = arith.constant 0 : index
    %6 = vector.load %arg4[%c0_4, %c0_5] : memref<1x256xf32, #tpu.memory_space<vmem>>, vector<1x256xf32>
    %7 = vector.broadcast %6 : vector<1x256xf32> to vector<32x256xf32>
    %8 = arith.addf %5, %7 : vector<32x256xf32>
    %cst_6 = arith.constant 0.000000e+00 : f32
    %9 = vector.broadcast %cst_6 : f32 to vector<32x256xf32>
    %10 = arith.maximumf %8, %9 : vector<32x256xf32>
    %c0_7 = arith.constant 0 : index
    %c0_8 = arith.constant 0 : index
    %11 = vector.load %arg8[%c0_7, %c0_8] : memref<32x128xf32, #tpu.memory_space<vmem>>, vector<32x128xf32>
    %12 = arith.truncf %10 : vector<32x256xf32> to vector<32x256xbf16>
    %c0_9 = arith.constant 0 : index
    %c0_10 = arith.constant 0 : index
    %13 = vector.load %arg5[%c0_9, %c0_10] : memref<256x128xbf16, #tpu.memory_space<vmem>>, vector<256x128xbf16>
    %cst_11 = arith.constant dense<0.000000e+00> : vector<32x128xf32>
    %14 = tpu.matmul %12, %13, %cst_11 {dimension_numbers = #tpu.dot_dimension_numbers<[1], [0], [0], [1], [0, 0, 1, 1], [], []>} : vector<32x256xbf16>, vector<256x128xbf16>, vector<32x128xf32> -> vector<32x128xf32>
    %15 = arith.addf %11, %14 : vector<32x128xf32>
    %c0_12 = arith.constant 0 : index
    %c0_13 = arith.constant 0 : index
    %16 = vector.load %arg8[%c0_12, %c0_13] : memref<32x128xf32, #tpu.memory_space<vmem>>, vector<32x128xf32>
    tpu.vector_store %arg8[%c0_12, %c0_13], %15 {strides = array<i32>} : memref<32x128xf32, #tpu.memory_space<vmem>>, vector<32x128xf32>,
    %c0_i32_14 = arith.constant 0 : i32
    %17 = arith.cmpi eq, %arg1, %c0_i32_14 : i32
    %18 = arith.extui %17 : i1 to i32
    %c0_i32_15 = arith.constant 0 : i32
    %19 = arith.cmpi ne, %18, %c0_i32_15 : i32
    scf.if %19 {
      %c0_16 = arith.constant 0 : index
      %c0_17 = arith.constant 0 : index
      %20 = vector.load %arg8[%c0_16, %c0_17] : memref<32x128xf32, #tpu.memory_space<vmem>>, vector<32x128xf32>
      %c0_18 = arith.constant 0 : index
      %c0_19 = arith.constant 0 : index
      %21 = vector.load %arg6[%c0_18, %c0_19] : memref<1x128xf32, #tpu.memory_space<vmem>>, vector<1x128xf32>
      %22 = vector.broadcast %21 : vector<1x128xf32> to vector<32x128xf32>
      %23 = arith.addf %20, %22 : vector<32x128xf32>
      %c0_20 = arith.constant 0 : index
      %c0_21 = arith.constant 0 : index
      %24 = vector.load %arg7[%c0_20, %c0_21] : memref<32x128xf32, #tpu.memory_space<vmem>>, vector<32x128xf32>
      tpu.vector_store %arg7[%c0_20, %c0_21], %23 {strides = array<i32>} : memref<32x128xf32, #tpu.memory_space<vmem>>, vector<32x128xf32>,
    } else {
    }
    return
  }
  func.func @transform_0(%arg0: i32, %arg1: i32) -> (i32, i32) {
    %c0_i32 = arith.constant 0 : i32
    %c0_i32_0 = arith.constant 0 : i32
    return %arg0, %c0_i32 : i32, i32
  }
  func.func @transform_1(%arg0: i32, %arg1: i32) -> (i32, i32) {
    %c0_i32 = arith.constant 0 : i32
    %c0_i32_0 = arith.constant 0 : i32
    return %c0_i32, %arg1 : i32, i32
  }
  func.func @transform_2(%arg0: i32, %arg1: i32) -> (i32, i32) {
    %c0_i32 = arith.constant 0 : i32
    %c0_i32_0 = arith.constant 0 : i32
    return %c0_i32, %arg1 : i32, i32
  }
  func.func @transform_3(%arg0: i32, %arg1: i32) -> (i32, i32) {
    %c0_i32 = arith.constant 0 : i32
    %c0_i32_0 = arith.constant 0 : i32
    return %arg1, %c0_i32 : i32, i32
  }
  func.func @transform_4(%arg0: i32, %arg1: i32) -> (i32, i32) {
    %c0_i32 = arith.constant 0 : i32
    %c0_i32_0 = arith.constant 0 : i32
    %c0_i32_1 = arith.constant 0 : i32
    return %c0_i32, %c0_i32_0 : i32, i32
  }
  func.func @transform_5(%arg0: i32, %arg1: i32) -> (i32, i32) {
    %c0_i32 = arith.constant 0 : i32
    %c0_i32_0 = arith.constant 0 : i32
    return %arg0, %c0_i32 : i32, i32
  }
}

</mosaic_0001>

<bundles_post_ra>
// kernel: tpu_custom_call.1
= control target key start
LH: loop header
LB: loop body
LE: loop exit
PB: predicated region body
PF: predicated region fallthrough
CT: control target
= control target key end

     0   :  { %10 = vsyncpa [#allocation4], 0  ;;  %s847_s0 = inlined_call_operand.hbm [shape: bf16[32,128], index: 0, kind: input, shape index: {}]   ;;  %s848_s1 = inlined_call_operand.hbm [shape: bf16[128,256], index: 1, kind: input, shape index: {}]   ;;  %s849_s2 = inlined_call_operand.hbm [shape: f32[1,256], index: 2, kind: input, shape index: {}]   ;;  %s850_s3 = inlined_call_operand.hbm [shape: bf16[256,128], index: 3, kind: input, shape index: {}]   ;;  %s851_s4 = inlined_call_operand.vmem [shape: f32[1,128], index: 4, kind: input, shape index: {}]   ;;  %s852_s5 = inlined_call_operand.hbm [shape: f32[32,128], index: 5, kind: output, shape index: {}]  }
   0x1   :  { %11 = vsyncpa [#allocation7], 0 }
   0x2   :  { %12 = vsyncpa [#allocation10], 0  ;;  %s31_s20 = sshll.u32 %s848_s1, 4  ;;  %s32_s20 = int_to_ptr.hbm [resolvable:$true] %s31_s20 }
   0x3   :  { %13 = vsyncpa [#allocation5], 0  ;;  %s784_s21 = smov [#allocation6]   ;;  %s18_s25 = sshll.u32 %s847_s0, 4  ;;  %s19_s25 = int_to_ptr.hbm [resolvable:$true] %s18_s25 }
   0x4   :  { %s33_s22 = sshll.u32 %s784_s21, 4  ;;  %s785_s26 = smov 128   ;;  %s34_s22 = int_to_ptr.vmem [resolvable:$true] %s33_s22 }
   0x5   :  { %s786_s27 = smov 8   ;;  %s787_s28 = smov [#allocation3]  }
   0x6   :  { %39 = dma.hbm_to_vmem [thread:$0]  %s32_s20, 2048, %s34_s22, [#allocation7], %s785_s26, %s785_s26, %s786_s27  }
   0x7   :  { %s20_s29 = sshll.u32 %s787_s28, 4  ;;  %s788_s1 = smov 64   ;;  %s21_s29 = int_to_ptr.vmem [resolvable:$true] %s20_s29 }
   0x8   :  { %s789_s30 = smov 4   ;;  %s45_s8 = sshll.u32 %s849_s2, 4  ;;  %s46_s8 = int_to_ptr.hbm [resolvable:$true] %s45_s8 }
   0x9   :  { %26 = dma.hbm_to_vmem [thread:$0]  %s19_s25, 256, %s21_s29, [#allocation4], %s788_s1, %s788_s1, %s789_s30  }
   0xa   :  { %s790_s9 = smov [#allocation8]   ;;  %s55_s12 = sshll.u32 %s850_s3, 4  ;;  %s56_s12 = int_to_ptr.hbm [resolvable:$true] %s55_s12 }
   0xb   :  { %s47_s0 = sshll.u32 %s790_s9, 4  ;;  %s791_s13 = smov [#allocation9]   ;;  %s48_s0 = int_to_ptr.vmem [resolvable:$true] %s47_s0 }
   0xc   :  { %50 = dma.hbm_to_vmem [thread:$0]  %s46_s8, 32, %s48_s0, [#allocation7]  }
   0xd   :  { %s57_s14 = sshll.u32 %s791_s13, 4  ;;  %s58_s14 = int_to_ptr.vmem [resolvable:$true] %s57_s14 }
   0xe   :  { %63 = dma.hbm_to_vmem [thread:$0]  %s56_s12, 2048, %s58_s14, [#allocation10], %s788_s1, %s788_s1, %s789_s30  }
   0xf   :  { %776 = dma.done.wait [#allocation4], 256  }
  0x10   :  { %777 = vsyncadd [#allocation4], 4294967040 }
  0x11   :  { %778 = dma.done.wait [#allocation7], 2080  }
  0x12   :  { %779 = vsyncadd [#allocation7], 4294965216 }
  0x13   :  { %780 = dma.done.wait [#allocation10], 2048  }
  0x14   :  { %781 = vsyncadd [#allocation10], 4294965248  ;;  %v542_v0 = vld [vmem:[#allocation6 + $0x70] sm:$0xf]  ;;  %v629_v1 = vld [vmem:[#allocation6 + $0x74] sm:$0xf0] }
  0x15   :  { %v628_v2 = vld [vmem:[#allocation6 + $0x74] sm:$0xf]  ;;  %v543_v3 = vor.u32 %v629_v1, %v542_v0  ;;  %v544_v4 = vld [vmem:[#allocation6 + $0x78] sm:$0xf0]  ;;  %v534_v5 = vld [vmem:[#allocation6 + $0x60] sm:$0xf] }
  0x16   :  { %v627_v6 = vld [vmem:[#allocation6 + $0x64] sm:$0xf0]  ;;  %v547_v7 = vor.u32 %v628_v2, %v544_v4  ;;  %v626_v8 = vld [vmem:[#allocation6 + $0x64] sm:$0xf]  ;;  %v536_v9 = vld [vmem:[#allocation6 + $0x68] sm:$0xf0] }
  0x17   :  { %208 = vmatpush.bf16.msra.mxu0 %v543_v3  ;;  %v535_v10 = vor.u32 %v627_v6, %v534_v5  ;;  %v539_v11 = vor.u32 %v626_v8, %v536_v9  ;;  %v526_v12 = vld [vmem:[#allocation6 + $0x50] sm:$0xf]  ;;  %v625_v13 = vld [vmem:[#allocation6 + $0x54] sm:$0xf0]  ;;  %v624_v14 = vld [vmem:[#allocation6 + $0x54] sm:$0xf] }
  0x18   :  { %227 = vmatpush.bf16.msra.mxu1 %v547_v7  ;;  %v528_v15 = vld [vmem:[#allocation6 + $0x58] sm:$0xf0]  ;;  %v527_v16 = vor.u32 %v625_v13, %v526_v12  ;;  %v518_v18 = vld [vmem:[#allocation6 + $0x40] sm:$0xf]  ;;  %v623_v19 = vld [vmem:[#allocation6 + $0x44] sm:$0xf0] }
  0x19   :  { %v531_v17 = vor.u32 %v624_v14, %v528_v15  ;;  %v622_v20 = vld [vmem:[#allocation6 + $0x44] sm:$0xf]  ;;  %v520_v21 = vld [vmem:[#allocation6 + $0x48] sm:$0xf0]  ;;  %v519_v22 = vor.u32 %v623_v19, %v518_v18  ;;  %v510_v24 = vld [vmem:[#allocation6 + $0x30] sm:$0xf] }
  0x1a   :  { %v523_v23 = vor.u32 %v622_v20, %v520_v21  ;;  %v621_v25 = vld [vmem:[#allocation6 + $0x34] sm:$0xf0]  ;;  %v620_v26 = vld [vmem:[#allocation6 + $0x34] sm:$0xf]  ;;  %v512_v27 = vld [vmem:[#allocation6 + $0x38] sm:$0xf0] }
  0x1b   :  { %209 = vmatpush.bf16.msra.mxu0 %v535_v10  ;;  %v511_v28 = vor.u32 %v621_v25, %v510_v24  ;;  %v515_v29 = vor.u32 %v620_v26, %v512_v27  ;;  %v502_v30 = vld [vmem:[#allocation6 + $0x20] sm:$0xf]  ;;  %v619_v31 = vld [vmem:[#allocation6 + $0x24] sm:$0xf0]  ;;  %v618_v32 = vld [vmem:[#allocation6 + $0x24] sm:$0xf] }
  0x1c   :  { %228 = vmatpush.bf16.msra.mxu1 %v539_v11  ;;  %v504_v33 = vld [vmem:[#allocation6 + $0x28] sm:$0xf0]  ;;  %v503_v34 = vor.u32 %v619_v31, %v502_v30  ;;  %v637_v35 = vld [vmem:[#allocation9 + $0x38] sm:$0xff]  ;;  %v494_v38 = vld [vmem:[#allocation6 + $0x10] sm:$0xf]  ;;  %s792_s15 = smov [#allocation11]  }
  0x1d   :  { %v645_v36 = vld [vmem:[#allocation9 + $0x78] sm:$0xff]  ;;  %v507_v37 = vor.u32 %v618_v32, %v504_v33  ;;  %v616_v40 = vld [vmem:[#allocation6 + $0x14] sm:$0xf]  ;;  %390 = vmatpush.bf16.msra.mxu2 %v637_v35  ;;  %v615_v47 = vld [vmem:[#allocation6 + $0x4] sm:$0xf0]  ;;  %s459_s16 = sshll.u32 %s792_s15, 4  ;;  %s460_s16 = int_to_ptr.vmem [resolvable:$true] %s459_s16 }
  0x1e   :  { %v617_v39 = vld [vmem:[#allocation6 + $0x14] sm:$0xf0]  ;;  %v496_v41 = vld [vmem:[#allocation6 + $0x18] sm:$0xf0]  ;;  %409 = vmatpush.bf16.msra.mxu3 %v645_v36  ;;  %v486_v46 = vld [vmem:[#allocation6] sm:$0xf] }
  0x1f   :  { %210 = vmatpush.bf16.msra.mxu0 %v527_v16  ;;  %v636_v42 = vld [vmem:[#allocation9 + $0x30] sm:$0xff]  ;;  %v495_v44 = vor.u32 %v617_v39, %v494_v38  ;;  %v499_v45 = vor.u32 %v616_v40, %v496_v41  ;;  %v614_v48 = vld [vmem:[#allocation6 + $0x4] sm:$0xf]  ;;  %v488_v49 = vld [vmem:[#allocation6 + $0x8] sm:$0xf0]  ;;  %v487_v52 = vor.u32 %v615_v47, %v486_v46  ;;  %s461_s18 = sshll.u32 %s852_s5, 4  ;;  %s462_s18 = int_to_ptr.hbm [resolvable:$true] %s461_s18 }
  0x20   :  { %229 = vmatpush.bf16.msra.mxu1 %v531_v17  ;;  %v644_v43 = vld [vmem:[#allocation9 + $0x70] sm:$0xff]  ;;  %v635_v50 = vld [vmem:[#allocation9 + $0x28] sm:$0xff]  ;;  %v491_v53 = vor.u32 %v614_v48, %v488_v49  ;;  %v634_v54 = vld [vmem:[#allocation9 + $0x20] sm:$0xff] }
  0x21   :  { %391 = vmatpush.bf16.msra.mxu2 %v636_v42  ;;  %v643_v51 = vld [vmem:[#allocation9 + $0x68] sm:$0xff]  ;;  %v642_v55 = vld [vmem:[#allocation9 + $0x60] sm:$0xff]  ;;  %v613_v57 = vld [vmem:[#allocation3 + $0x8] sm:$0xff] }
  0x22   :  { %410 = vmatpush.bf16.msra.mxu3 %v644_v43  ;;  %v612_v56 = vld [vmem:[#allocation3] sm:$0xff]  ;;  %v633_v58 = vld [vmem:[#allocation9 + $0x18] sm:$0xff]  ;;  %v630_v0 = vld [vmem:[#allocation9] sm:$0xff] }
  0x23   :  { %211 = vmatpush.bf16.msra.mxu0 %v519_v22  ;;  %v641_v59 = vld [vmem:[#allocation9 + $0x58] sm:$0xff]  ;;  %v632_v60 = vld [vmem:[#allocation9 + $0x10] sm:$0xff]  ;;  %v631_v62 = vld [vmem:[#allocation9 + $0x8] sm:$0xff] }
  0x24   :  { %230 = vmatpush.bf16.msra.mxu1 %v523_v23  ;;  %v640_v61 = vld [vmem:[#allocation9 + $0x50] sm:$0xff]  ;;  %v639_v63 = vld [vmem:[#allocation9 + $0x48] sm:$0xff]  ;;  %v638_v1 = vld [vmem:[#allocation9 + $0x40] sm:$0xff] }
  0x25   :  { %392 = vmatpush.bf16.msra.mxu2 %v635_v50  ;;  %v110_v2 = vld [vmem:[#allocation8] sm:$0x3] }
  0x26   :  { %411 = vmatpush.bf16.msra.mxu3 %v643_v51  ;;  %v112_v5 = vperm.slane %v110_v2, 0  ;;  %v113_v6 = vperm.slane %v110_v2, 1 }
  0x27   :  { %212 = vmatpush.bf16.msra.mxu0 %v511_v28 }
  0x28   :  { %231 = vmatpush.bf16.msra.mxu1 %v515_v29 }
  0x29   :  { %393 = vmatpush.bf16.msra.mxu2 %v634_v54 }
  0x2a   :  { %412 = vmatpush.bf16.msra.mxu3 %v642_v55 }
  0x2b   :  { %213 = vmatpush.bf16.msra.mxu0 %v503_v34  ;;  %v655_v34 = vld [vmem:[%s851_s4] ss:$0 sm:$0xff] }
  0x2c   :  { %232 = vmatpush.bf16.msra.mxu1 %v507_v37 }
  0x2d   :  { %394 = vmatpush.bf16.msra.mxu2 %v633_v58 }
  0x2e   :  { %413 = vmatpush.bf16.msra.mxu3 %v641_v59 }
  0x2f   :  { %214 = vmatpush.bf16.msra.mxu0 %v495_v44 }
  0x30   :  { %233 = vmatpush.bf16.msra.mxu1 %v499_v45 }
  0x31   :  { %395 = vmatpush.bf16.msra.mxu2 %v632_v60 }
  0x32   :  { %414 = vmatpush.bf16.msra.mxu3 %v640_v61 }
  0x33   :  { %215 = vmatpush.bf16.msra.mxu0 %v487_v52 }
  0x34   :  { %234 = vmatpush.bf16.msra.mxu1 %v491_v53 }
  0x35   :  { %396 = vmatpush.bf16.msra.mxu2 %v631_v62 }
  0x36   :  { %216 = vmatmul.bf16.vlgmr.msra.gmra.mxu0 %v612_v56  ;;  %415 = vmatpush.bf16.msra.mxu3 %v639_v63 }
  0x37   :  { %235 = vmatmul.bf16.vlgmr.msra.gmra.mxu1 %v612_v56 }
  0x39   :  { %397 = vmatpush.bf16.msra.mxu2 %v630_v0 }
  0x3a   :  { %416 = vmatpush.bf16.msra.mxu3 %v638_v1 }
  0x46   :  { %221 = vmatmul.bf16.gmra.mxu0 %v613_v57 }
  0x47   :  { %240 = vmatmul.bf16.gmra.mxu1 %v613_v57 }
  0xb3   :  { %v217_v3 = vpop.f32.mrf.mxu0 }
  0xb4   :  { %v236_v4 = vpop.f32.mrf.mxu1  ;;  %v218_v7 = vadd.f32 %v217_v3, %v112_v5 }
  0xb5   :  { %v237_v8 = vadd.f32 %v236_v4, %v113_v6 }
  0xb6   :  { %v246_v13 = vmax.f32 %v218_v7, 0.0 }
  0xb7   :  { %v247_v15 = vmax.f32 %v237_v8, 0.0 }
  0xbb   :  { %v219_v9 = vpop.f32.mrf.mxu0 }
  0xbc   :  { %v220_v10 = vadd.f32 %v219_v9, %v112_v5  ;;  %v238_v11 = vpop.f32.mrf.mxu1 }
  0xbd   :  { %v239_v12 = vadd.f32 %v238_v11, %v113_v6 }
  0xbe   :  { %v248_v14 = vmax.f32 %v220_v10, 0.0 }
  0xbf   :  { %v249_v16 = vmax.f32 %v239_v12, 0.0 }
  0xc0   :  { %v258_v17 = vpack.c.bf16 %v248_v14, %v246_v13 }
  0xc1   :  { %v259_v18 = vpack.c.bf16 %v249_v16, %v247_v15 }
  0xc2   :  { %398 = vmatmul.bf16.vlgmr.msra.gmra.mxu2 %v258_v17 }
  0xc3   :  { %417 = vmatmul.bf16.vlgmr.msra.gmra.mxu3 %v259_v18  ;;  %v222_v19 = vpop.f32.mrf.mxu0 }
  0xc4   :  { %v241_v20 = vpop.f32.mrf.mxu1  ;;  %v223_v21 = vadd.f32 %v222_v19, %v112_v5 }
  0xc5   :  { %v242_v22 = vadd.f32 %v241_v20, %v113_v6 }
  0xc6   :  { %v250_v27 = vmax.f32 %v223_v21, 0.0 }
  0xc7   :  { %v251_v29 = vmax.f32 %v242_v22, 0.0 }
  0xcb   :  { %v224_v23 = vpop.f32.mrf.mxu0 }
  0xcc   :  { %v225_v24 = vadd.f32 %v224_v23, %v112_v5  ;;  %v243_v25 = vpop.f32.mrf.mxu1 }
  0xcd   :  { %v244_v26 = vadd.f32 %v243_v25, %v113_v6 }
  0xce   :  { %v252_v28 = vmax.f32 %v225_v24, 0.0 }
  0xcf   :  { %v253_v30 = vmax.f32 %v244_v26, 0.0 }
  0xd0   :  { %v260_v31 = vpack.c.bf16 %v252_v28, %v250_v27 }
  0xd1   :  { %v261_v32 = vpack.c.bf16 %v253_v30, %v251_v29 }
  0xd2   :  { %403 = vmatmul.bf16.gmra.mxu2 %v260_v31 }
  0xd3   :  { %422 = vmatmul.bf16.gmra.mxu3 %v261_v32 }
 0x145   :  { %v399_v33 = vpop.f32.mrf.mxu2 }
 0x146   :  { %v418_v35 = vpop.f32.mrf.mxu3 }
 0x147   :  { %v419_v36 = vadd.f32 %v418_v35, %v399_v33 }
 0x149   :  { %v447_v37 = vadd.f32 %v655_v34, %v419_v36 }
 0x14b   :  { %451 = vst [vmem:[#allocation11] sm:$0xff] %v447_v37 }
 0x14d   :  { %v401_v38 = vpop.f32.mrf.mxu2 }
 0x14e   :  { %v420_v39 = vpop.f32.mrf.mxu3 }
 0x14f   :  { %v421_v40 = vadd.f32 %v420_v39, %v401_v38 }
 0x151   :  { %v448_v41 = vadd.f32 %v655_v34, %v421_v40 }
 0x153   :  { %452 = vst [vmem:[#allocation11 + $0x8] sm:$0xff] %v448_v41 }
 0x155   :  { %v404_v42 = vpop.f32.mrf.mxu2 }
 0x156   :  { %v423_v43 = vpop.f32.mrf.mxu3 }
 0x157   :  { %v424_v44 = vadd.f32 %v423_v43, %v404_v42 }
 0x159   :  { %v449_v45 = vadd.f32 %v655_v34, %v424_v44 }
 0x15b   :  { %453 = vst [vmem:[#allocation11 + $0x10] sm:$0xff] %v449_v45 }
 0x15d   :  { %v406_v46 = vpop.f32.mrf.mxu2 }
 0x15e   :  { %v425_v47 = vpop.f32.mrf.mxu3 }
 0x15f   :  { %v426_v48 = vadd.f32 %v425_v47, %v406_v46 }
 0x161   :  { %v450_v49 = vadd.f32 %v655_v34, %v426_v48 }
 0x163   :  { %454 = vst [vmem:[#allocation11 + $0x18] sm:$0xff] %v450_v49 }
 0x164   :  { %467 = dma.vmem_to_hbm [thread:$0]  %s460_s16, 512, %s462_s18, [#allocation5], %s785_s26, %s785_s26, %s786_s27  }
 0x165   :  { %782 = dma.done.wait [#allocation5], 512  }
 0x166   :  { %783 = vsyncadd [#allocation5], 4294966784 }
 0x167   :  { %472 = vsyncpa [#allocation4], 1 }
 0x168   :  { %473 = vsyncpa [#allocation7], 1 }
 0x169   :  { %474 = vsyncpa [#allocation10], 1 }
 0x16a   :  { %475 = vsyncpa [#allocation5], 1 }

// kernel: tpu_custom_call.1
= control target key start
LH: loop header
LB: loop body
LE: loop exit
PB: predicated region body
PF: predicated region fallthrough
CT: control target
= control target key end

     0   :  { %10 = vsyncpa [#allocation4], 0  ;;  %s847_s0 = inlined_call_operand.hbm [shape: bf16[32,128], index: 0, kind: input, shape index: {}]   ;;  %s848_s1 = inlined_call_operand.hbm [shape: bf16[128,256], index: 1, kind: input, shape index: {}]   ;;  %s849_s2 = inlined_call_operand.hbm [shape: f32[1,256], index: 2, kind: input, shape index: {}]   ;;  %s850_s3 = inlined_call_operand.hbm [shape: bf16[256,128], index: 3, kind: input, shape index: {}]   ;;  %s851_s4 = inlined_call_operand.vmem [shape: f32[1,128], index: 4, kind: input, shape index: {}]   ;;  %s852_s5 = inlined_call_operand.hbm [shape: f32[32,128], index: 5, kind: output, shape index: {}]  }
   0x1   :  { %11 = vsyncpa [#allocation7], 0 }
   0x2   :  { %12 = vsyncpa [#allocation10], 0  ;;  %s31_s20 = sshll.u32 %s848_s1, 4  ;;  %s32_s20 = int_to_ptr.hbm [resolvable:$true] %s31_s20 }
   0x3   :  { %13 = vsyncpa [#allocation5], 0  ;;  %s784_s21 = smov [#allocation6]   ;;  %s18_s25 = sshll.u32 %s847_s0, 4  ;;  %s19_s25 = int_to_ptr.hbm [resolvable:$true] %s18_s25 }
   0x4   :  { %s33_s22 = sshll.u32 %s784_s21, 4  ;;  %s785_s26 = smov 128   ;;  %s34_s22 = int_to_ptr.vmem [resolvable:$true] %s33_s22 }
   0x5   :  { %s786_s27 = smov 8   ;;  %s787_s28 = smov [#allocation3]  }
   0x6   :  { %39 = dma.hbm_to_vmem [thread:$0]  %s32_s20, 2048, %s34_s22, [#allocation7], %s785_s26, %s785_s26, %s786_s27  }
   0x7   :  { %s20_s29 = sshll.u32 %s787_s28, 4  ;;  %s788_s1 = smov 64   ;;  %s21_s29 = int_to_ptr.vmem [resolvable:$true] %s20_s29 }
   0x8   :  { %s789_s30 = smov 4   ;;  %s45_s8 = sshll.u32 %s849_s2, 4  ;;  %s46_s8 = int_to_ptr.hbm [resolvable:$true] %s45_s8 }
   0x9   :  { %26 = dma.hbm_to_vmem [thread:$0]  %s19_s25, 256, %s21_s29, [#allocation4], %s788_s1, %s788_s1, %s789_s30  }
   0xa   :  { %s790_s9 = smov [#allocation8]   ;;  %s55_s12 = sshll.u32 %s850_s3, 4  ;;  %s56_s12 = int_to_ptr.hbm [resolvable:$true] %s55_s12 }
   0xb   :  { %s47_s0 = sshll.u32 %s790_s9, 4  ;;  %s791_s13 = smov [#allocation9]   ;;  %s48_s0 = int_to_ptr.vmem [resolvable:$true] %s47_s0 }
   0xc   :  { %50 = dma.hbm_to_vmem [thread:$0]  %s46_s8, 32, %s48_s0, [#allocation7]  }
   0xd   :  { %s57_s14 = sshll.u32 %s791_s13, 4  ;;  %s58_s14 = int_to_ptr.vmem [resolvable:$true] %s57_s14 }
   0xe   :  { %63 = dma.hbm_to_vmem [thread:$0]  %s56_s12, 2048, %s58_s14, [#allocation10], %s788_s1, %s788_s1, %s789_s30  }
   0xf   :  { %776 = dma.done.wait [#allocation4], 256  }
  0x10   :  { %777 = vsyncadd [#allocation4], 4294967040 }
  0x11   :  { %778 = dma.done.wait [#allocation7], 2080  }
  0x12   :  { %779 = vsyncadd [#allocation7], 4294965216 }
  0x13   :  { %780 = dma.done.wait [#allocation10], 2048  }
  0x14   :  { %781 = vsyncadd [#allocation10], 4294965248  ;;  %v542_v0 = vld [vmem:[#allocation6 + $0x70] sm:$0xf]  ;;  %v629_v1 = vld [vmem:[#allocation6 + $0x74] sm:$0xf0] }
  0x15   :  { %v628_v2 = vld [vmem:[#allocation6 + $0x74] sm:$0xf]  ;;  %v543_v3 = vor.u32 %v629_v1, %v542_v0  ;;  %v544_v4 = vld [vmem:[#allocation6 + $0x78] sm:$0xf0]  ;;  %v534_v5 = vld [vmem:[#allocation6 + $0x60] sm:$0xf] }
  0x16   :  { %v627_v6 = vld [vmem:[#allocation6 + $0x64] sm:$0xf0]  ;;  %v547_v7 = vor.u32 %v628_v2, %v544_v4  ;;  %v626_v8 = vld [vmem:[#allocation6 + $0x64] sm:$0xf]  ;;  %v536_v9 = vld [vmem:[#allocation6 + $0x68] sm:$0xf0] }
  0x17   :  { %208 = vmatpush.bf16.msra.mxu0 %v543_v3  ;;  %v535_v10 = vor.u32 %v627_v6, %v534_v5  ;;  %v539_v11 = vor.u32 %v626_v8, %v536_v9  ;;  %v526_v12 = vld [vmem:[#allocation6 + $0x50] sm:$0xf]  ;;  %v625_v13 = vld [vmem:[#allocation6 + $0x54] sm:$0xf0]  ;;  %v624_v14 = vld [vmem:[#allocation6 + $0x54] sm:$0xf] }
  0x18   :  { %227 = vmatpush.bf16.msra.mxu1 %v547_v7  ;;  %v528_v15 = vld [vmem:[#allocation6 + $0x58] sm:$0xf0]  ;;  %v527_v16 = vor.u32 %v625_v13, %v526_v12  ;;  %v518_v18 = vld [vmem:[#allocation6 + $0x40] sm:$0xf]  ;;  %v623_v19 = vld [vmem:[#allocation6 + $0x44] sm:$0xf0] }
  0x19   :  { %v531_v17 = vor.u32 %v624_v14, %v528_v15  ;;  %v622_v20 = vld [vmem:[#allocation6 + $0x44] sm:$0xf]  ;;  %v520_v21 = vld [vmem:[#allocation6 + $0x48] sm:$0xf0]  ;;  %v519_v22 = vor.u32 %v623_v19, %v518_v18  ;;  %v510_v24 = vld [vmem:[#allocation6 + $0x30] sm:$0xf] }
  0x1a   :  { %v523_v23 = vor.u32 %v622_v20, %v520_v21  ;;  %v621_v25 = vld [vmem:[#allocation6 + $0x34] sm:$0xf0]  ;;  %v620_v26 = vld [vmem:[#allocation6 + $0x34] sm:$0xf]  ;;  %v512_v27 = vld [vmem:[#allocation6 + $0x38] sm:$0xf0] }
  0x1b   :  { %209 = vmatpush.bf16.msra.mxu0 %v535_v10  ;;  %v511_v28 = vor.u32 %v621_v25, %v510_v24  ;;  %v515_v29 = vor.u32 %v620_v26, %v512_v27  ;;  %v502_v30 = vld [vmem:[#allocation6 + $0x20] sm:$0xf]  ;;  %v619_v31 = vld [vmem:[#allocation6 + $0x24] sm:$0xf0]  ;;  %v618_v32 = vld [vmem:[#allocation6 + $0x24] sm:$0xf] }
  0x1c   :  { %228 = vmatpush.bf16.msra.mxu1 %v539_v11  ;;  %v504_v33 = vld [vmem:[#allocation6 + $0x28] sm:$0xf0]  ;;  %v503_v34 = vor.u32 %v619_v31, %v502_v30  ;;  %v637_v35 = vld [vmem:[#allocation9 + $0x38] sm:$0xff]  ;;  %v494_v38 = vld [vmem:[#allocation6 + $0x10] sm:$0xf]  ;;  %s792_s15 = smov [#allocation11]  }
  0x1d   :  { %v645_v36 = vld [vmem:[#allocation9 + $0x78] sm:$0xff]  ;;  %v507_v37 = vor.u32 %v618_v32, %v504_v33  ;;  %v616_v40 = vld [vmem:[#allocation6 + $0x14] sm:$0xf]  ;;  %390 = vmatpush.bf16.msra.mxu2 %v637_v35  ;;  %v615_v47 = vld [vmem:[#allocation6 + $0x4] sm:$0xf0]  ;;  %s459_s16 = sshll.u32 %s792_s15, 4  ;;  %s460_s16 = int_to_ptr.vmem [resolvable:$true] %s459_s16 }
  0x1e   :  { %v617_v39 = vld [vmem:[#allocation6 + $0x14] sm:$0xf0]  ;;  %v496_v41 = vld [vmem:[#allocation6 + $0x18] sm:$0xf0]  ;;  %409 = vmatpush.bf16.msra.mxu3 %v645_v36  ;;  %v486_v46 = vld [vmem:[#allocation6] sm:$0xf] }
  0x1f   :  { %210 = vmatpush.bf16.msra.mxu0 %v527_v16  ;;  %v636_v42 = vld [vmem:[#allocation9 + $0x30] sm:$0xff]  ;;  %v495_v44 = vor.u32 %v617_v39, %v494_v38  ;;  %v499_v45 = vor.u32 %v616_v40, %v496_v41  ;;  %v614_v48 = vld [vmem:[#allocation6 + $0x4] sm:$0xf]  ;;  %v488_v49 = vld [vmem:[#allocation6 + $0x8] sm:$0xf0]  ;;  %v487_v52 = vor.u32 %v615_v47, %v486_v46  ;;  %s461_s18 = sshll.u32 %s852_s5, 4  ;;  %s462_s18 = int_to_ptr.hbm [resolvable:$true] %s461_s18 }
  0x20   :  { %229 = vmatpush.bf16.msra.mxu1 %v531_v17  ;;  %v644_v43 = vld [vmem:[#allocation9 + $0x70] sm:$0xff]  ;;  %v635_v50 = vld [vmem:[#allocation9 + $0x28] sm:$0xff]  ;;  %v491_v53 = vor.u32 %v614_v48, %v488_v49  ;;  %v634_v54 = vld [vmem:[#allocation9 + $0x20] sm:$0xff] }
  0x21   :  { %391 = vmatpush.bf16.msra.mxu2 %v636_v42  ;;  %v643_v51 = vld [vmem:[#allocation9 + $0x68] sm:$0xff]  ;;  %v642_v55 = vld [vmem:[#allocation9 + $0x60] sm:$0xff]  ;;  %v613_v57 = vld [vmem:[#allocation3 + $0x8] sm:$0xff] }
  0x22   :  { %410 = vmatpush.bf16.msra.mxu3 %v644_v43  ;;  %v612_v56 = vld [vmem:[#allocation3] sm:$0xff]  ;;  %v633_v58 = vld [vmem:[#allocation9 + $0x18] sm:$0xff]  ;;  %v630_v0 = vld [vmem:[#allocation9] sm:$0xff] }
  0x23   :  { %211 = vmatpush.bf16.msra.mxu0 %v519_v22  ;;  %v641_v59 = vld [vmem:[#allocation9 + $0x58] sm:$0xff]  ;;  %v632_v60 = vld [vmem:[#allocation9 + $0x10] sm:$0xff]  ;;  %v631_v62 = vld [vmem:[#allocation9 + $0x8] sm:$0xff] }
  0x24   :  { %230 = vmatpush.bf16.msra.mxu1 %v523_v23  ;;  %v640_v61 = vld [vmem:[#allocation9 + $0x50] sm:$0xff]  ;;  %v639_v63 = vld [vmem:[#allocation9 + $0x48] sm:$0xff]  ;;  %v638_v1 = vld [vmem:[#allocation9 + $0x40] sm:$0xff] }
  0x25   :  { %392 = vmatpush.bf16.msra.mxu2 %v635_v50  ;;  %v110_v2 = vld [vmem:[#allocation8] sm:$0x3] }
  0x26   :  { %411 = vmatpush.bf16.msra.mxu3 %v643_v51  ;;  %v112_v5 = vperm.slane %v110_v2, 0  ;;  %v113_v6 = vperm.slane %v110_v2, 1 }
  0x27   :  { %212 = vmatpush.bf16.msra.mxu0 %v511_v28 }
  0x28   :  { %231 = vmatpush.bf16.msra.mxu1 %v515_v29 }
  0x29   :  { %393 = vmatpush.bf16.msra.mxu2 %v634_v54 }
  0x2a   :  { %412 = vmatpush.bf16.msra.mxu3 %v642_v55 }
  0x2b   :  { %213 = vmatpush.bf16.msra.mxu0 %v503_v34  ;;  %v655_v34 = vld [vmem:[%s851_s4] ss:$0 sm:$0xff] }
  0x2c   :  { %232 = vmatpush.bf16.msra.mxu1 %v507_v37 }
  0x2d   :  { %394 = vmatpush.bf16.msra.mxu2 %v633_v58 }
  0x2e   :  { %413 = vmatpush.bf16.msra.mxu3 %v641_v59 }
  0x2f   :  { %214 = vmatpush.bf16.msra.mxu0 %v495_v44 }
  0x30   :  { %233 = vmatpush.bf16.msra.mxu1 %v499_v45 }
  0x31   :  { %395 = vmatpush.bf16.msra.mxu2 %v632_v60 }
  0x32   :  { %414 = vmatpush.bf16.msra.mxu3 %v640_v61 }
  0x33   :  { %215 = vmatpush.bf16.msra.mxu0 %v487_v52 }
  0x34   :  { %234 = vmatpush.bf16.msra.mxu1 %v491_v53 }
  0x35   :  { %396 = vmatpush.bf16.msra.mxu2 %v631_v62 }
  0x36   :  { %216 = vmatmul.bf16.vlgmr.msra.gmra.mxu0 %v612_v56  ;;  %415 = vmatpush.bf16.msra.mxu3 %v639_v63 }
  0x37   :  { %235 = vmatmul.bf16.vlgmr.msra.gmra.mxu1 %v612_v56 }
  0x39   :  { %397 = vmatpush.bf16.msra.mxu2 %v630_v0 }
  0x3a   :  { %416 = vmatpush.bf16.msra.mxu3 %v638_v1 }
  0x46   :  { %221 = vmatmul.bf16.gmra.mxu0 %v613_v57 }
  0x47   :  { %240 = vmatmul.bf16.gmra.mxu1 %v613_v57 }
  0xb3   :  { %v217_v3 = vpop.f32.mrf.mxu0 }
  0xb4   :  { %v236_v4 = vpop.f32.mrf.mxu1  ;;  %v218_v7 = vadd.f32 %v217_v3, %v112_v5 }
  0xb5   :  { %v237_v8 = vadd.f32 %v236_v4, %v113_v6 }
  0xb6   :  { %v246_v13 = vmax.f32 %v218_v7, 0.0 }
  0xb7   :  { %v247_v15 = vmax.f32 %v237_v8, 0.0 }
  0xbb   :  { %v219_v9 = vpop.f32.mrf.mxu0 }
  0xbc   :  { %v220_v10 = vadd.f32 %v219_v9, %v112_v5  ;;  %v238_v11 = vpop.f32.mrf.mxu1 }
  0xbd   :  { %v239_v12 = vadd.f32 %v238_v11, %v113_v6 }
  0xbe   :  { %v248_v14 = vmax.f32 %v220_v10, 0.0 }
  0xbf   :  { %v249_v16 = vmax.f32 %v239_v12, 0.0 }
  0xc0   :  { %v258_v17 = vpack.c.bf16 %v248_v14, %v246_v13 }
  0xc1   :  { %v259_v18 = vpack.c.bf16 %v249_v16, %v247_v15 }
  0xc2   :  { %398 = vmatmul.bf16.vlgmr.msra.gmra.mxu2 %v258_v17 }
  0xc3   :  { %417 = vmatmul.bf16.vlgmr.msra.gmra.mxu3 %v259_v18  ;;  %v222_v19 = vpop.f32.mrf.mxu0 }
  0xc4   :  { %v241_v20 = vpop.f32.mrf.mxu1  ;;  %v223_v21 = vadd.f32 %v222_v19, %v112_v5 }
  0xc5   :  { %v242_v22 = vadd.f32 %v241_v20, %v113_v6 }
  0xc6   :  { %v250_v27 = vmax.f32 %v223_v21, 0.0 }
  0xc7   :  { %v251_v29 = vmax.f32 %v242_v22, 0.0 }
  0xcb   :  { %v224_v23 = vpop.f32.mrf.mxu0 }
  0xcc   :  { %v225_v24 = vadd.f32 %v224_v23, %v112_v5  ;;  %v243_v25 = vpop.f32.mrf.mxu1 }
  0xcd   :  { %v244_v26 = vadd.f32 %v243_v25, %v113_v6 }
  0xce   :  { %v252_v28 = vmax.f32 %v225_v24, 0.0 }
  0xcf   :  { %v253_v30 = vmax.f32 %v244_v26, 0.0 }
  0xd0   :  { %v260_v31 = vpack.c.bf16 %v252_v28, %v250_v27 }
  0xd1   :  { %v261_v32 = vpack.c.bf16 %v253_v30, %v251_v29 }
  0xd2   :  { %403 = vmatmul.bf16.gmra.mxu2 %v260_v31 }
  0xd3   :  { %422 = vmatmul.bf16.gmra.mxu3 %v261_v32 }
 0x145   :  { %v399_v33 = vpop.f32.mrf.mxu2 }
 0x146   :  { %v418_v35 = vpop.f32.mrf.mxu3 }
 0x147   :  { %v419_v36 = vadd.f32 %v418_v35, %v399_v33 }
 0x149   :  { %v447_v37 = vadd.f32 %v655_v34, %v419_v36 }
 0x14b   :  { %451 = vst [vmem:[#allocation11] sm:$0xff] %v447_v37 }
 0x14d   :  { %v401_v38 = vpop.f32.mrf.mxu2 }
 0x14e   :  { %v420_v39 = vpop.f32.mrf.mxu3 }
 0x14f   :  { %v421_v40 = vadd.f32 %v420_v39, %v401_v38 }
 0x151   :  { %v448_v41 = vadd.f32 %v655_v34, %v421_v40 }
 0x153   :  { %452 = vst [vmem:[#allocation11 + $0x8] sm:$0xff] %v448_v41 }
 0x155   :  { %v404_v42 = vpop.f32.mrf.mxu2 }
 0x156   :  { %v423_v43 = vpop.f32.mrf.mxu3 }
 0x157   :  { %v424_v44 = vadd.f32 %v423_v43, %v404_v42 }
 0x159   :  { %v449_v45 = vadd.f32 %v655_v34, %v424_v44 }
 0x15b   :  { %453 = vst [vmem:[#allocation11 + $0x10] sm:$0xff] %v449_v45 }
 0x15d   :  { %v406_v46 = vpop.f32.mrf.mxu2 }
 0x15e   :  { %v425_v47 = vpop.f32.mrf.mxu3 }
 0x15f   :  { %v426_v48 = vadd.f32 %v425_v47, %v406_v46 }
 0x161   :  { %v450_v49 = vadd.f32 %v655_v34, %v426_v48 }
 0x163   :  { %454 = vst [vmem:[#allocation11 + $0x18] sm:$0xff] %v450_v49 }
 0x164   :  { %467 = dma.vmem_to_hbm [thread:$0]  %s460_s16, 512, %s462_s18, [#allocation5], %s785_s26, %s785_s26, %s786_s27  }
 0x165   :  { %782 = dma.done.wait [#allocation5], 512  }
 0x166   :  { %783 = vsyncadd [#allocation5], 4294966784 }
 0x167   :  { %472 = vsyncpa [#allocation4], 1 }
 0x168   :  { %473 = vsyncpa [#allocation7], 1 }
 0x169   :  { %474 = vsyncpa [#allocation10], 1 }
 0x16a   :  { %475 = vsyncpa [#allocation5], 1 }

</bundles_post_ra>
